<compile_context>
chip_gen: v7x
topology: tpu7x:2x2x1
jax: 0.10.0
libtpu: 0.0.40
codegen_flags: <defaults>
</compile_context>

<pallas_src>
import jax
import jax.numpy as jnp
from jax.experimental import pallas as pl
from jax.experimental.pallas import tpu as pltpu

IN_DIM = 21 * 2            # 42
H1, H2, H3, OUT = 100, 50, 100, 26
NUM_LAYERS = 4
PAD = 128                  # lane-width padding of the packed weight slab
DEFAULT_TILE_B = 512       # batch rows per grid step (well under scoped VMEM)


def _round_up(x, m):
    return (x + m - 1) // m * m


def _mlp_kernel(x_ref, w_ref, b_ref, o_ref):
    """One batch tile of the fused 4-layer MLP.

    x_ref: (TB, 42)        io dtype (f32 or bf16)
    w_ref: (4, 128, 128)   io dtype; layer l weights at [l, :in_l, :out_l], 0 elsewhere
    b_ref: (4, 128)        f32;      layer l bias    at [l, :out_l],        0 elsewhere
    o_ref: (TB, 26)        f32
    """
    wdt = w_ref.dtype
    x = x_ref[...]                                                # (TB, 42)

    # Layer 1: (TB,42) @ (42,128) -> f32 (TB,128); lanes >= 100 are exactly 0.
    h = jnp.dot(x, w_ref[0, :IN_DIM, :], preferred_element_type=jnp.float32)
    h = jnp.maximum(h + b_ref[0:1, :], 0.0)

    # Layers 2..3: full 128x128 MXU tiles; zero-padded rows/cols keep the
    # padding lanes at exactly 0 through bias-add and ReLU.
    h = jnp.dot(h.astype(wdt), w_ref[1], preferred_element_type=jnp.float32)
    h = jnp.maximum(h + b_ref[1:2, :], 0.0)

    h = jnp.dot(h.astype(wdt), w_ref[2], preferred_element_type=jnp.float32)
    h = jnp.maximum(h + b_ref[2:3, :], 0.0)

    # Layer 4 (no ReLU).
    h = jnp.dot(h.astype(wdt), w_ref[3], preferred_element_type=jnp.float32)
    h = h + b_ref[3:4, :]

    # OUT=26 < 128 lanes -> masked store; left as-is since HBM writeback bytes,
    # not the store slot, dominate for this kernel (pad to 128 only if vst binds).
    o_ref[...] = h[:, :OUT].astype(o_ref.dtype)


def init_raw_params(key):
    """nn.Linear-style init; W stored pre-transposed as (in, out), b as (out,)."""
    dims = [(IN_DIM, H1), (H1, H2), (H2, H3), (H3, OUT)]
    raw = []
    for fan_in, fan_out in dims:
        key, kw, kb = jax.random.split(key, 3)
        bound = 1.0 / float(fan_in) ** 0.5
        w = jax.random.uniform(kw, (fan_in, fan_out), jnp.float32, -bound, bound)
        b = jax.random.uniform(kb, (fan_out,), jnp.float32, -bound, bound)
        raw.append((w, b))
    return raw


def pack_params(raw, io_dtype=jnp.float32):
    """Pack 8 small tensors into 2 padded slabs (fewer DMA descriptors per call).

    Weights -> (4,128,128) slab in `io_dtype` (bf16 halves HBM read bytes);
    biases  -> (4,128) f32 table (bias add / ReLU stay f32 on all chips).
    """
    w_slab = jnp.zeros((NUM_LAYERS, PAD, PAD), io_dtype)
    b_slab = jnp.zeros((NUM_LAYERS, PAD), jnp.float32)
    for l, (w, b) in enumerate(raw):
        w_slab = w_slab.at[l, : w.shape[0], : w.shape[1]].set(w.astype(io_dtype))
        b_slab = b_slab.at[l, : b.shape[0]].set(b.astype(jnp.float32))
    return w_slab, b_slab


def mlp_forward(x, packed_params, *, tile_b=DEFAULT_TILE_B):
    """Forward pass matching MyNeuralNet.forward; returns squeezed (B, 26) logits."""
    w_slab, b_slab = packed_params
    io_dtype = w_slab.dtype

    x2d = x.reshape(-1, IN_DIM).astype(io_dtype)      # x.view(-1, 21*2)
    B = x2d.shape[0]

    # Batch tile: multiple of 8 sublanes, capped at tile_b; pad B to a multiple.
    tb = _round_up(min(tile_b, _round_up(B, 8)), 8)
    Bp = _round_up(B, tb)
    if Bp != B:
        x2d = jnp.pad(x2d, ((0, Bp - B), (0, 0)))

    grid = (pl.cdiv(Bp, tb),)

    out = pl.pallas_call(
        _mlp_kernel,
        out_shape=jax.ShapeDtypeStruct((Bp, OUT), jnp.float32),
        grid=grid,
        in_specs=[
            # x tiles stream over the batch grid (double-buffered by Pallas).
            pl.BlockSpec((tb, IN_DIM), lambda i: (i, 0)),
            # Weight / bias slabs: constant index_map -> VMEM-resident, no re-DMA.
            pl.BlockSpec((NUM_LAYERS, PAD, PAD), lambda i: (0, 0, 0)),
            pl.BlockSpec((NUM_LAYERS, PAD), lambda i: (0, 0)),
        ],
        out_specs=pl.BlockSpec((tb, OUT), lambda i: (i, 0)),
        compiler_params=pltpu.CompilerParams(
            # Batch axis is embarrassingly parallel -> 2-TC sharding on v7x.
            dimension_semantics=("parallel",),
        ),
    )(x2d, w_slab, b_slab)

    if Bp != B:
        out = out[:B]
    return jnp.squeeze(out)                           # matches x.squeeze()


def _reference_forward(x, raw, io_dtype=jnp.float32):
    """Pure-JAX reference with the same dtype policy as the kernel."""
    h = x.reshape(-1, IN_DIM).astype(io_dtype)
    for l, (w, b) in enumerate(raw):
        h = jnp.dot(h.astype(io_dtype), w.astype(io_dtype),
                    preferred_element_type=jnp.float32) + b
        if l < NUM_LAYERS - 1:
            h = jnp.maximum(h, 0.0)
    return jnp.squeeze(h)


if __name__ == "__main__":
    key = jax.random.PRNGKey(0)
    kparams, kx = jax.random.split(key)
    raw = init_raw_params(kparams)

    # Hand-landmark-style inputs: (batch=8, 21 keypoints, 2 coords) -> (8, 42).
    x = jax.random.normal(kx, (8, 21, 2), dtype=jnp.float32)

    # f32 path (exact PyTorch semantics).
    packed_f32 = pack_params(raw, jnp.float32)
    out = jax.block_until_ready(mlp_forward(x, packed_f32))
    ref = _reference_forward(x, raw, jnp.float32)
    assert out.shape == (8, OUT), out.shape
    assert jnp.allclose(out, ref, atol=1e-4, rtol=1e-4), "f32 mismatch vs reference"

    # bf16 input/weight path (half the HBM read bytes for large B; f32 accumulate).
    packed_bf16 = pack_params(raw, jnp.bfloat16)
    out_bf16 = jax.block_until_ready(mlp_forward(x, packed_bf16))
    ref_bf16 = _reference_forward(x, raw, jnp.bfloat16)
    assert out_bf16.shape == (8, OUT), out_bf16.shape
    assert jnp.allclose(out_bf16, ref_bf16, atol=1e-2, rtol=1e-2), "bf16 mismatch"

    # Multi-tile batch exercises the pipelined / padded-B grid path.
    xb = jax.random.normal(jax.random.PRNGKey(1), (1000, 21, 2), dtype=jnp.float32)
    outb = jax.block_until_ready(mlp_forward(xb, packed_f32, tile_b=256))
    refb = _reference_forward(xb, raw, jnp.float32)
    assert outb.shape == (1000, OUT), outb.shape
    assert jnp.allclose(outb, refb, atol=1e-4, rtol=1e-4), "gridded mismatch"

    print("KERNEL_OK")
</pallas_src>

<mosaic_0001>
module attributes {stable_mosaic.version = 11 : i64} {
  func.func @_mlp_kernel(%arg0: i32, %arg1: memref<8x42xf32, #tpu.memory_space<vmem>>, %arg2: memref<4x128x128xf32, #tpu.memory_space<vmem>>, %arg3: memref<4x128xf32, #tpu.memory_space<vmem>>, %arg4: memref<8x26xf32, #tpu.memory_space<vmem>>) attributes {dimension_semantics = [#tpu.dimension_semantics<parallel>], iteration_bounds = array<i64: 1>, scalar_prefetch = 0 : i64, scratch_operands = 0 : i64, tpu.core_type = #tpu.core_type<tc>, window_params = [{transform_indices = @transform_0, window_bounds = array<i64: 8, 42>}, {pipeline_mode = #tpu.pipeline_mode<synchronous>, transform_indices = @transform_1, window_bounds = array<i64: 4, 128, 128>}, {pipeline_mode = #tpu.pipeline_mode<synchronous>, transform_indices = @transform_2, window_bounds = array<i64: 4, 128>}, {transform_indices = @transform_3, window_bounds = array<i64: 8, 26>}]} {
    %c0 = arith.constant 0 : index
    %c0_0 = arith.constant 0 : index
    %0 = vector.load %arg1[%c0, %c0_0] : memref<8x42xf32, #tpu.memory_space<vmem>>, vector<8x42xf32>
    %c0_1 = arith.constant 0 : index
    %c0_2 = arith.constant 0 : index
    %c0_3 = arith.constant 0 : index
    %1 = vector.load %arg2[%c0_1, %c0_2, %c0_3] : memref<4x128x128xf32, #tpu.memory_space<vmem>>, vector<1x42x128xf32>
    %2 = vector.shape_cast %1 : vector<1x42x128xf32> to vector<42x128xf32>
    %cst = arith.constant dense<0.000000e+00> : vector<8x128xf32>
    %3 = tpu.matmul %0, %2, %cst {dimension_numbers = #tpu.dot_dimension_numbers<[1], [0], [0], [1], [0, 0, 1, 1], [], []>} : vector<8x42xf32>, vector<42x128xf32>, vector<8x128xf32> -> vector<8x128xf32>
    %c0_4 = arith.constant 0 : index
    %c0_5 = arith.constant 0 : index
    %4 = vector.load %arg3[%c0_4, %c0_5] : memref<4x128xf32, #tpu.memory_space<vmem>>, vector<1x128xf32>
    %5 = vector.broadcast %4 : vector<1x128xf32> to vector<8x128xf32>
    %6 = arith.addf %3, %5 : vector<8x128xf32>
    %cst_6 = arith.constant 0.000000e+00 : f32
    %7 = vector.broadcast %cst_6 : f32 to vector<8x128xf32>
    %8 = arith.maximumf %6, %7 : vector<8x128xf32>
    %c1 = arith.constant 1 : index
    %c0_7 = arith.constant 0 : index
    %c0_8 = arith.constant 0 : index
    %9 = vector.load %arg2[%c1, %c0_7, %c0_8] : memref<4x128x128xf32, #tpu.memory_space<vmem>>, vector<1x128x128xf32>
    %10 = vector.shape_cast %9 : vector<1x128x128xf32> to vector<128x128xf32>
    %cst_9 = arith.constant dense<0.000000e+00> : vector<8x128xf32>
    %11 = tpu.matmul %8, %10, %cst_9 {dimension_numbers = #tpu.dot_dimension_numbers<[1], [0], [0], [1], [0, 0, 1, 1], [], []>} : vector<8x128xf32>, vector<128x128xf32>, vector<8x128xf32> -> vector<8x128xf32>
    %c1_10 = arith.constant 1 : index
    %c0_11 = arith.constant 0 : index
    %12 = vector.load %arg3[%c1_10, %c0_11] : memref<4x128xf32, #tpu.memory_space<vmem>>, vector<1x128xf32>
    %13 = vector.broadcast %12 : vector<1x128xf32> to vector<8x128xf32>
    %14 = arith.addf %11, %13 : vector<8x128xf32>
    %cst_12 = arith.constant 0.000000e+00 : f32
    %15 = vector.broadcast %cst_12 : f32 to vector<8x128xf32>
    %16 = arith.maximumf %14, %15 : vector<8x128xf32>
    %c2 = arith.constant 2 : index
    %c0_13 = arith.constant 0 : index
    %c0_14 = arith.constant 0 : index
    %17 = vector.load %arg2[%c2, %c0_13, %c0_14] : memref<4x128x128xf32, #tpu.memory_space<vmem>>, vector<1x128x128xf32>
    %18 = vector.shape_cast %17 : vector<1x128x128xf32> to vector<128x128xf32>
    %cst_15 = arith.constant dense<0.000000e+00> : vector<8x128xf32>
    %19 = tpu.matmul %16, %18, %cst_15 {dimension_numbers = #tpu.dot_dimension_numbers<[1], [0], [0], [1], [0, 0, 1, 1], [], []>} : vector<8x128xf32>, vector<128x128xf32>, vector<8x128xf32> -> vector<8x128xf32>
    %c2_16 = arith.constant 2 : index
    %c0_17 = arith.constant 0 : index
    %20 = vector.load %arg3[%c2_16, %c0_17] : memref<4x128xf32, #tpu.memory_space<vmem>>, vector<1x128xf32>
    %21 = vector.broadcast %20 : vector<1x128xf32> to vector<8x128xf32>
    %22 = arith.addf %19, %21 : vector<8x128xf32>
    %cst_18 = arith.constant 0.000000e+00 : f32
    %23 = vector.broadcast %cst_18 : f32 to vector<8x128xf32>
    %24 = arith.maximumf %22, %23 : vector<8x128xf32>
    %c3 = arith.constant 3 : index
    %c0_19 = arith.constant 0 : index
    %c0_20 = arith.constant 0 : index
    %25 = vector.load %arg2[%c3, %c0_19, %c0_20] : memref<4x128x128xf32, #tpu.memory_space<vmem>>, vector<1x128x128xf32>
    %26 = vector.shape_cast %25 : vector<1x128x128xf32> to vector<128x128xf32>
    %cst_21 = arith.constant dense<0.000000e+00> : vector<8x128xf32>
    %27 = tpu.matmul %24, %26, %cst_21 {dimension_numbers = #tpu.dot_dimension_numbers<[1], [0], [0], [1], [0, 0, 1, 1], [], []>} : vector<8x128xf32>, vector<128x128xf32>, vector<8x128xf32> -> vector<8x128xf32>
    %c3_22 = arith.constant 3 : index
    %c0_23 = arith.constant 0 : index
    %28 = vector.load %arg3[%c3_22, %c0_23] : memref<4x128xf32, #tpu.memory_space<vmem>>, vector<1x128xf32>
    %29 = vector.broadcast %28 : vector<1x128xf32> to vector<8x128xf32>
    %30 = arith.addf %27, %29 : vector<8x128xf32>
    %31 = vector.extract_strided_slice %30 {offsets = [0, 0], sizes = [8, 26], strides = [1, 1]} : vector<8x128xf32> to vector<8x26xf32>
    %c0_24 = arith.constant 0 : index
    %c0_25 = arith.constant 0 : index
    %32 = vector.load %arg4[%c0_24, %c0_25] : memref<8x26xf32, #tpu.memory_space<vmem>>, vector<8x26xf32>
    tpu.vector_store %arg4[%c0_24, %c0_25], %31 {strides = array<i32>} : memref<8x26xf32, #tpu.memory_space<vmem>>, vector<8x26xf32>,
    return
  }
  func.func @transform_0(%arg0: i32) -> (i32, i32) {
    %c0_i32 = arith.constant 0 : i32
    %c0_i32_0 = arith.constant 0 : i32
    return %arg0, %c0_i32 : i32, i32
  }
  func.func @transform_1(%arg0: i32) -> (i32, i32, i32) {
    %c0_i32 = arith.constant 0 : i32
    %c0_i32_0 = arith.constant 0 : i32
    %c0_i32_1 = arith.constant 0 : i32
    %c0_i32_2 = arith.constant 0 : i32
    return %c0_i32, %c0_i32_0, %c0_i32_1 : i32, i32, i32
  }
  func.func @transform_2(%arg0: i32) -> (i32, i32) {
    %c0_i32 = arith.constant 0 : i32
    %c0_i32_0 = arith.constant 0 : i32
    %c0_i32_1 = arith.constant 0 : i32
    return %c0_i32, %c0_i32_0 : i32, i32
  }
  func.func @transform_3(%arg0: i32) -> (i32, i32) {
    %c0_i32 = arith.constant 0 : i32
    %c0_i32_0 = arith.constant 0 : i32
    return %arg0, %c0_i32 : i32, i32
  }
}

</mosaic_0001>

<bundles_post_ra>
// kernel: tpu_custom_call.1
= control target key start
LH: loop header
LB: loop body
LE: loop exit
PB: predicated region body
PF: predicated region fallthrough
CT: control target
= control target key end

     0   :  { %8 = vsyncpa [#allocation3], 0  ;;  %s894_s0 = inlined_call_operand.hbm [shape: f32[8,42], index: 0, kind: input, shape index: {}]   ;;  %s895_s1 = inlined_call_operand.hbm [shape: f32[4,128,128], index: 1, kind: input, shape index: {}]   ;;  %s896_s2 = inlined_call_operand.vmem [shape: f32[4,128], index: 2, kind: input, shape index: {}]   ;;  %s897_s3 = inlined_call_operand.hbm [shape: f32[8,26], index: 3, kind: output, shape index: {}]  }
   0x1   :  { %9 = vsyncpa [#allocation6], 0 }
   0x2   :  { %10 = vsyncpa [#allocation4], 0  ;;  %s775_s12 = smov [#allocation2]   ;;  %s776_s14 = smov [#allocation5]  }
   0x3   :  { %s17_s13 = sshll.u32 %s775_s12, 4  ;;  %s26_s15 = sshll.u32 %s776_s14, 4  ;;  %s18_s13 = int_to_ptr.vmem [resolvable:$true] %s17_s13  ;;  %s804_s15 = int_to_ptr.vmem [resolvable:$true] %s26_s15 }
   0x4   :  { %s703_s18 = scalar_lea.hbm %s894_s0, 128 }
   0x5   :  { %p704_p0 = scmp.ne.s32.totalorder %s894_s0, %s703_s18  ;;  %p707_p1 = scmp.lt.u32.totalorder %s703_s18, %s894_s0 }
   0x7   :  { %p709_p2 = pnand %p707_p1, %p704_p0 }
   0x9   :  { %712 = shalt.err (!%p709_p2)
}
   0xa   :  { %s713_s23 = scalar_lea.vmem %s18_s13, 128  ;;  %p718_p4 = scmp.lt.s32.totalorder %s18_s13, %s18_s13 }
   0xb   :  { %p714_p3 = scmp.ne.s32.totalorder %s18_s13, %s713_s23  ;;  %p719_p5 = scmp.lt.s32.totalorder %s713_s23, %s713_s23 }
   0xd   :  { %p720_p6 = por %p719_p5, %p718_p4 }
   0xf   :  { %p721_p7 = pnand %p720_p6, %p714_p3 }
  0x11   :  { %724 = shalt.err (!%p721_p7)
}
  0x12   :  { %20 = dma.hbm_to_vmem [thread:$0]  %s894_s0, 128, %s18_s13, [#allocation3]  }
  0x13   :  { %s725_s28 = scalar_lea.hbm %s895_s1, 8192 }
  0x14   :  { %p726_p8 = scmp.ne.s32.totalorder %s895_s1, %s725_s28  ;;  %p729_p9 = scmp.lt.u32.totalorder %s725_s28, %s895_s1 }
  0x16   :  { %p731_p10 = pnand %p729_p9, %p726_p8 }
  0x18   :  { %734 = shalt.err (!%p731_p10)
}
  0x19   :  { %s735_s6 = scalar_lea.vmem %s804_s15, 8192  ;;  %p740_p12 = scmp.lt.s32.totalorder %s804_s15, %s804_s15 }
  0x1a   :  { %p736_p11 = scmp.ne.s32.totalorder %s804_s15, %s735_s6  ;;  %p741_p13 = scmp.lt.s32.totalorder %s735_s6, %s735_s6 }
  0x1c   :  { %p742_p0 = por %p741_p13, %p740_p12 }
  0x1e   :  { %p743_p1 = pnand %p742_p0, %p736_p11 }
  0x20   :  { %746 = shalt.err (!%p743_p1)
}
  0x21   :  { %s777_s0 = smov 128   ;;  %s778_s7 = smov 8  }
  0x22   :  { %32 = dma.hbm_to_vmem [thread:$0]  %s895_s1, 8192, %s804_s15, [#allocation6], %s777_s0, %s777_s0, %s778_s7  }
  0x23   :  { %769 = dma.done.wait [#allocation3], 128  }
  0x24   :  { %770 = vsyncadd [#allocation3], 4294967168 }
  0x25   :  { %771 = dma.done.wait [#allocation6], 8192  }
  0x26   :  { %772 = vsyncadd [#allocation6], 4294959104  ;;  %v779_v0 = vmov 0.0|0.0   ;;  %vm780_vm0 = vmmov 0   ;;  %v781_v1 = vmov 0.0   ;;  %v42_v2 = vld [vmem:[#allocation5] sm:$0xff] }
  0x27   :  { %612 = vmatprep.subr.bf16.mxu0 %v779_v0  ;;  %622 = vmatprep.subr.bf16.mxu1 %v779_v0  ;;  %v43_v3 = vld [vmem:[#allocation5 + $0x8] sm:$0xff]  ;;  %v44_v4 = vld [vmem:[#allocation5 + $0x10] sm:$0xff]  ;;  %v45_v6 = vld [vmem:[#allocation5 + $0x18] sm:$0xff]  ;;  %vm57_vm1 = vcmask 1041408   ;;  %vm782_vm2 = vmmov 1   ;;  %vm53_vm4 = vcmask 343040  }
  0x28   :  { %504 = vmatprep.mubr.msk.f32.mxu0 %vm780_vm0, %v781_v1  ;;  %539 = vmatprep.mubr.msk.f32.mxu1 %vm780_vm0, %v781_v1  ;;  %v613_v5 = vpack.c.bf16 %v43_v3, %v42_v2  ;;  %v133_v7 = vld [vmem:[#allocation5 + $0x80] sm:$0xff]  ;;  %v134_v8 = vld [vmem:[#allocation5 + $0x88] sm:$0xff]  ;;  %v616_v9 = vpack.c.bf16 %v45_v6, %v44_v4  ;;  %v135_v11 = vld [vmem:[#allocation5 + $0x90] sm:$0xff]  ;;  %s783_s17 = smov [#allocation7]   ;;  %vm410_vm5 = vcmask 211968  }
  0x29   :  { %v623_v10 = vpack.c.bf16 %v134_v8, %v133_v7  ;;  %v136_v12 = vld [vmem:[#allocation5 + $0x98] sm:$0xff]  ;;  %v46_v13 = vld [vmem:[#allocation5 + $0x20] sm:$0xff]  ;;  %v47_v14 = vld [vmem:[#allocation5 + $0x28] sm:$0x3]  ;;  %s418_s18 = sshll.u32 %s783_s17, 4  ;;  %s419_s18 = int_to_ptr.vmem [resolvable:$true] %s418_s18 }
  0x2a   :  { %614 = vmatpush3.bf16.msra.mxu0 %v613_v5  ;;  %v626_v15 = vpack.c.bf16 %v136_v12, %v135_v11  ;;  %v137_v16 = vld [vmem:[#allocation5 + $0xa0] sm:$0xff]  ;;  %v138_v17 = vld [vmem:[#allocation5 + $0xa8] sm:$0xff]  ;;  %v619_v18 = vpack.c.bf16 %v47_v14, %v46_v13  ;;  %vm620_vm3 = vmpackc.low %vm57_vm1, %vm782_vm2  ;;  %s747_s19 = scalar_lea.vmem %s419_s18, 128  ;;  %p752_p3 = scmp.lt.s32.totalorder %s419_s18, %s419_s18 }
  0x2b   :  { %615 = vmatprep.subr.bf16.mxu0 %v779_v0  ;;  %624 = vmatpush3.bf16.msra.mxu1 %v623_v10  ;;  %v629_v19 = vpack.c.bf16 %v138_v17, %v137_v16  ;;  %v139_v20 = vld [vmem:[#allocation5 + $0xb0] sm:$0xff]  ;;  %v140_v21 = vld [vmem:[#allocation5 + $0xb8] sm:$0xff]  ;;  %v141_v24 = vld [vmem:[#allocation5 + $0xc0] sm:$0xff]  ;;  %p748_p2 = scmp.ne.s32.totalorder %s419_s18, %s747_s19  ;;  %p753_p4 = scmp.lt.s32.totalorder %s747_s19, %s747_s19 }
  0x2c   :  { %625 = vmatprep.subr.bf16.mxu1 %v779_v0  ;;  %v41_v22 = vld [vmem:[#allocation2] sm:$0xff]  ;;  %v632_v23 = vpack.c.bf16 %v140_v21, %v139_v20  ;;  %v142_v25 = vld [vmem:[#allocation5 + $0xc8] sm:$0xff]  ;;  %v143_v27 = vld [vmem:[#allocation5 + $0xd0] sm:$0xff] }
  0x2d   :  { %v635_v26 = vpack.c.bf16 %v142_v25, %v141_v24  ;;  %v144_v28 = vld [vmem:[#allocation5 + $0xd8] sm:$0xff]  ;;  %v145_v30 = vld [vmem:[#allocation5 + $0xe0] sm:$0xff]  ;;  %v146_v31 = vld [vmem:[#allocation5 + $0xe8] sm:$0xff]  ;;  %p754_p5 = por %p753_p4, %p752_p3 }
  0x2e   :  { %617 = vmatpush3.bf16.msra.mxu0 %v616_v9  ;;  %v638_v29 = vpack.c.bf16 %v144_v28, %v143_v27  ;;  %v641_v32 = vpack.c.bf16 %v146_v31, %v145_v30  ;;  %v147_v33 = vld [vmem:[#allocation5 + $0xf0] sm:$0xff]  ;;  %v148_v34 = vld [vmem:[#allocation5 + $0xf8] sm:$0xff]  ;;  %v226_v36 = vld [vmem:[#allocation5 + $0x100] sm:$0xff] }
  0x2f   :  { %618 = vmatprep.subr.bf16.mxu0 %v779_v0  ;;  %627 = vmatpush3.bf16.msra.mxu1 %v626_v15  ;;  %v644_v35 = vpack.c.bf16 %v148_v34, %v147_v33  ;;  %v227_v37 = vld [vmem:[#allocation5 + $0x108] sm:$0xff]  ;;  %v228_v38 = vld [vmem:[#allocation5 + $0x110] sm:$0xff]  ;;  %v229_v40 = vld [vmem:[#allocation5 + $0x118] sm:$0xff]  ;;  %p755_p6 = pnand %p754_p5, %p748_p2 }
  0x30   :  { %628 = vmatprep.subr.bf16.mxu1 %v779_v0  ;;  %v647_v39 = vpack.c.bf16 %v227_v37, %v226_v36  ;;  %v650_v41 = vpack.c.bf16 %v229_v40, %v228_v38  ;;  %v230_v42 = vld [vmem:[#allocation5 + $0x120] sm:$0xff]  ;;  %v231_v43 = vld [vmem:[#allocation5 + $0x128] sm:$0xff]  ;;  %v232_v45 = vld [vmem:[#allocation5 + $0x130] sm:$0xff] }
  0x31   :  { %v653_v44 = vpack.c.bf16 %v231_v43, %v230_v42  ;;  %v233_v46 = vld [vmem:[#allocation5 + $0x138] sm:$0xff]  ;;  %v234_v48 = vld [vmem:[#allocation5 + $0x140] sm:$0xff]  ;;  %v235_v49 = vld [vmem:[#allocation5 + $0x148] sm:$0xff] }
  0x32   :  { %621 = vmatpush3.bf16.msk.msra.mxu0 %vm620_vm3, %v619_v18  ;;  %v656_v47 = vpack.c.bf16 %v233_v46, %v232_v45  ;;  %v659_v50 = vpack.c.bf16 %v235_v49, %v234_v48  ;;  %v236_v51 = vld [vmem:[#allocation5 + $0x150] sm:$0xff]  ;;  %v237_v52 = vld [vmem:[#allocation5 + $0x158] sm:$0xff]  ;;  %v238_v54 = vld [vmem:[#allocation5 + $0x160] sm:$0xff] }
  0x33   :  { %646 = vmatprep.subr.bf16.mxu0 %v779_v0  ;;  %630 = vmatpush3.bf16.msra.mxu1 %v629_v19  ;;  %v662_v53 = vpack.c.bf16 %v237_v52, %v236_v51  ;;  %v239_v55 = vld [vmem:[#allocation5 + $0x168] sm:$0xff]  ;;  %v428_v57 = vld [vmem:[%s896_s2] ss:$0 sm:$0xff]  ;;  %v240_v62 = vld [vmem:[#allocation5 + $0x170] sm:$0xff] }
  0x34   :  { %631 = vmatprep.subr.bf16.mxu1 %v779_v0  ;;  %v665_v56 = vpack.c.bf16 %v239_v55, %v238_v54  ;;  %v241_v63 = vld [vmem:[#allocation5 + $0x178] sm:$0xff]  ;;  %v319_v3 = vld [vmem:[#allocation5 + $0x180] sm:$0xff]  ;;  %v320_v4 = vld [vmem:[#allocation5 + $0x188] sm:$0xff] }
  0x35   :  { %505 = vmatmul.mubr.msk.f32.vlgmr.msra.gmra.mrb[0].mxu0 %vm53_vm4, %v41_v22  ;;  %v668_v2 = vpack.c.bf16 %v241_v63, %v240_v62  ;;  %v321_v5 = vld [vmem:[#allocation5 + $0x190] sm:$0xff]  ;;  %v671_v6 = vpack.c.bf16 %v320_v4, %v319_v3  ;;  %v322_v7 = vld [vmem:[#allocation5 + $0x198] sm:$0xff]  ;;  %v323_v9 = vld [vmem:[#allocation5 + $0x1a0] sm:$0xff] }
  0x36   :  { %574 = vmatprep.mubr.msk.f32.mxu0 %vm780_vm0, %v781_v1  ;;  %648 = vmatpush3.bf16.msra.mxu0 %v647_v39  ;;  %v674_v8 = vpack.c.bf16 %v322_v7, %v321_v5  ;;  %v324_v10 = vld [vmem:[#allocation5 + $0x1a8] sm:$0xff]  ;;  %v326_v12 = vld [vmem:[#allocation5 + $0x1b8] sm:$0xff]  ;;  %v327_v14 = vld [vmem:[#allocation5 + $0x1c0] sm:$0xff] }
  0x37   :  { %633 = vmatpush3.bf16.msra.mxu1 %v632_v23  ;;  %649 = vmatprep.subr.bf16.mxu0 %v779_v0  ;;  %v677_v11 = vpack.c.bf16 %v324_v10, %v323_v9  ;;  %v328_v15 = vld [vmem:[#allocation5 + $0x1c8] sm:$0xff]  ;;  %v329_v17 = vld [vmem:[#allocation5 + $0x1d0] sm:$0xff]  ;;  %v330_v18 = vld [vmem:[#allocation5 + $0x1d8] sm:$0xff] }
  0x38   :  { %634 = vmatprep.subr.bf16.mxu1 %v779_v0  ;;  %v683_v16 = vpack.c.bf16 %v328_v15, %v327_v14  ;;  %v686_v19 = vpack.c.bf16 %v330_v18, %v329_v17  ;;  %v331_v20 = vld [vmem:[#allocation5 + $0x1e0] sm:$0xff]  ;;  %v332_v21 = vld [vmem:[#allocation5 + $0x1e8] sm:$0xff]  ;;  %v431_v23 = vld [vmem:[%s896_s2 + $0x1] ss:$0 sm:$0xff] }
  0x39   :  { %v689_v22 = vpack.c.bf16 %v332_v21, %v331_v20  ;;  %v333_v28 = vld [vmem:[#allocation5 + $0x1f0] sm:$0xff]  ;;  %v432_v31 = vld [vmem:[%s896_s2 + $0x2] ss:$0 sm:$0xff] }
  0x3a   :  { %651 = vmatpush3.bf16.msra.mxu0 %v650_v41 }
  0x3b   :  { %636 = vmatpush3.bf16.msra.mxu1 %v635_v26  ;;  %652 = vmatprep.subr.bf16.mxu0 %v779_v0 }
  0x3c   :  { %637 = vmatprep.subr.bf16.mxu1 %v779_v0 }
  0x3e   :  { %654 = vmatpush3.bf16.msra.mxu0 %v653_v44 }
  0x3f   :  { %639 = vmatpush3.bf16.msra.mxu1 %v638_v29  ;;  %655 = vmatprep.subr.bf16.mxu0 %v779_v0  ;;  %v334_v29 = vld [vmem:[#allocation5 + $0x1f8] sm:$0xff] }
  0x40   :  { %640 = vmatprep.subr.bf16.mxu1 %v779_v0  ;;  %v692_v30 = vpack.c.bf16 %v334_v29, %v333_v28 }
  0x42   :  { %657 = vmatpush3.bf16.msra.mxu0 %v656_v47 }
  0x43   :  { %642 = vmatpush3.bf16.msra.mxu1 %v641_v32  ;;  %658 = vmatprep.subr.bf16.mxu0 %v779_v0 }
  0x44   :  { %643 = vmatprep.subr.bf16.mxu1 %v779_v0 }
  0x46   :  { %660 = vmatpush3.bf16.msra.mxu0 %v659_v50 }
  0x47   :  { %645 = vmatpush3.bf16.msra.mxu1 %v644_v35  ;;  %661 = vmatprep.subr.bf16.mxu0 %v779_v0  ;;  %v433_v35 = vld [vmem:[%s896_s2 + $0x3] ss:$0 sm:$0xff] }
  0x48   :  { %670 = vmatprep.subr.bf16.mxu1 %v779_v0 }
  0x4a   :  { %663 = vmatpush3.bf16.msra.mxu0 %v662_v53 }
  0x4b   :  { %664 = vmatprep.subr.bf16.mxu0 %v779_v0 }
  0x4e   :  { %666 = vmatpush3.bf16.msra.mxu0 %v665_v56 }
  0x4f   :  { %667 = vmatprep.subr.bf16.mxu0 %v779_v0 }
  0x52   :  { %669 = vmatpush3.bf16.msra.mxu0 %v668_v2 }
 0x108   :  { %v127_v58 = vpop.f32.mrb[0].mxu0 }
 0x109   :  { %v128_v59 = vadd.f32 %v428_v57, %v127_v58  ;;  %v506_v60 = vpop.f32.mrb[1].mxu0 }
 0x10b   :  { %v131_v61 = vmax.f32 %v128_v59, 0.0 }
 0x10d   :  { %540 = vmatmul.mubr.f32.vlgmr.msra.gmra.mrb[0].mxu1 %v131_v61 }
 0x10e   :  { %609 = vmatprep.mubr.msk.f32.mxu1 %vm780_vm0, %v781_v1  ;;  %672 = vmatpush3.bf16.msra.mxu1 %v671_v6  ;;  %v325_v1 = vld [vmem:[#allocation5 + $0x1b0] sm:$0xff] }
 0x10f   :  { %673 = vmatprep.subr.bf16.mxu1 %v779_v0  ;;  %v680_v13 = vpack.c.bf16 %v326_v12, %v325_v1 }
 0x112   :  { %675 = vmatpush3.bf16.msra.mxu1 %v674_v8 }
 0x113   :  { %676 = vmatprep.subr.bf16.mxu1 %v779_v0 }
 0x116   :  { %678 = vmatpush3.bf16.msra.mxu1 %v677_v11 }
 0x117   :  { %679 = vmatprep.subr.bf16.mxu1 %v779_v0 }
 0x11a   :  { %681 = vmatpush3.bf16.msra.mxu1 %v680_v13 }
 0x11b   :  { %682 = vmatprep.subr.bf16.mxu1 %v779_v0 }
 0x11e   :  { %684 = vmatpush3.bf16.msra.mxu1 %v683_v16 }
 0x11f   :  { %685 = vmatprep.subr.bf16.mxu1 %v779_v0 }
 0x122   :  { %687 = vmatpush3.bf16.msra.mxu1 %v686_v19 }
 0x123   :  { %688 = vmatprep.subr.bf16.mxu1 %v779_v0 }
 0x126   :  { %690 = vmatpush3.bf16.msra.mxu1 %v689_v22 }
 0x127   :  { %691 = vmatprep.subr.bf16.mxu1 %v779_v0 }
 0x12a   :  { %693 = vmatpush3.bf16.msra.mxu1 %v692_v30 }
 0x1e0   :  { %v220_v24 = vpop.f32.mrb[0].mxu1 }
 0x1e1   :  { %v221_v25 = vadd.f32 %v431_v23, %v220_v24  ;;  %v541_v26 = vpop.f32.mrb[1].mxu1 }
 0x1e3   :  { %v224_v27 = vmax.f32 %v221_v25, 0.0 }
 0x1e5   :  { %575 = vmatmul.mubr.f32.vlgmr.msra.gmra.mrb[2].mxu0 %v224_v27 }
 0x2b8   :  { %v313_v32 = vpop.f32.mrb[2].mxu0 }
 0x2b9   :  { %v314_v33 = vadd.f32 %v432_v31, %v313_v32  ;;  %v576_v0 = vpop.f32.mrb[3].mxu0 }
 0x2bb   :  { %v317_v34 = vmax.f32 %v314_v33, 0.0 }
 0x2bd   :  { %610 = vmatmul.mubr.f32.vlgmr.msra.gmra.mrb[2].mxu1 %v317_v34 }
 0x390   :  { %v406_v36 = vpop.f32.mrb[2].mxu1 }
 0x391   :  { %v407_v37 = vadd.f32 %v433_v35, %v406_v36  ;;  %v611_v38 = vpop.f32.mrb[3].mxu1 }
 0x393   :  { %411 = vst.msk [vmem:[#allocation7] sm:$0xff] %vm410_vm5, %v407_v37 }
 0x394   :  { %758 = shalt.err (!%p755_p6)
}
 0x395   :  { %s759_s22 = scalar_lea.hbm %s897_s3, 128 }
 0x396   :  { %p760_p7 = scmp.ne.s32.totalorder %s897_s3, %s759_s22  ;;  %p763_p8 = scmp.lt.u32.totalorder %s759_s22, %s897_s3 }
 0x398   :  { %p765_p9 = pnand %p763_p8, %p760_p7 }
 0x39a   :  { %768 = shalt.err (!%p765_p9)
}
 0x39b   :  { %421 = dma.vmem_to_hbm [thread:$0]  %s419_s18, 128, %s897_s3, [#allocation4]  }
 0x39c   :  { %773 = dma.done.wait [#allocation4], 128  }
 0x39d   :  { %774 = vsyncadd [#allocation4], 4294967168 }
 0x39e   :  { %425 = vsyncpa [#allocation3], 1 }
 0x39f   :  { %426 = vsyncpa [#allocation6], 1 }
 0x3a0   :  { %427 = vsyncpa [#allocation4], 1 }

</bundles_post_ra>
